<compile_context>
chip_gen: v5e
topology: v5e:2x2
jax: 0.10.0
libtpu: 0.0.40
codegen_flags: <defaults>
</compile_context>

<pallas_src>
import jax
import jax.numpy as jnp
from jax.experimental import pallas as pl
from jax.experimental.pallas import tpu as pltpu

_LANE = 128
_MIN_GRID_STEPS = 4  # >= 2 steps per TensorCore on v7x, and real pipelining


def _h_sigmoid_kernel(x_ref, o_ref):
    # Upcast to f32, compute clamp(x + 3, 0, 6) * (1/6), cast back on store.
    x = x_ref[...].astype(jnp.float32)
    y = jnp.clip(x + 3.0, 0.0, 6.0) * (1.0 / 6.0)
    o_ref[...] = y.astype(o_ref.dtype)


def _sublane_packing(dtype):
    itemsize = jnp.dtype(dtype).itemsize
    if itemsize >= 4:
        return 8
    if itemsize == 2:
        return 16
    return 32


def _generation_defaults():
    """(target_block_bytes, vmem_limit_bytes_or_None) per TPU generation."""
    kind = ""
    try:
        kind = jax.devices()[0].device_kind.lower()
    except Exception:
        pass
    if "v5" in kind and ("lite" in kind or "5e" in kind):
        # v5e scoped-VMEM default is 16 MiB: 2 MiB blocks -> 8 MiB of pipeline
        # buffers, plenty of headroom; per-step overhead stays < ~5% at
        # ~0.82 TB/s HBM.
        return 2 * 1024 * 1024, None
    if "7" in kind:
        # v7x: 3.2 TB/s makes the ~0.35 us/step overhead a >10% tax at 4 MiB
        # blocks; 8 MiB blocks need 32 MiB of buffers -> raise the scoped
        # limit to 48 MiB (physical VMEM is 64 MiB).
        return 8 * 1024 * 1024, 48 * 1024 * 1024
    # v6e (and other 128 MiB-VMEM parts): 6 MiB blocks fit the 32 MiB scoped
    # default (4 x 6 = 24 MiB) with no override.
    return 6 * 1024 * 1024, None


def _row_block(rows, width, itemsize, packing, target_block_bytes):
    """Rows per block: ~target bytes, packing-aligned, >= _MIN_GRID_STEPS."""
    if rows <= packing:
        return rows
    target_rows = max(packing,
                      (target_block_bytes // (width * itemsize))
                      // packing * packing)
    tr = min(target_rows, rows)
    if rows >= _MIN_GRID_STEPS * packing:
        cap = max(packing, pl.cdiv(rows, _MIN_GRID_STEPS) // packing * packing)
        tr = min(tr, cap)
    if tr < rows:
        tr = max(packing, tr // packing * packing)
    return tr


def h_sigmoid(x, *, target_block_bytes=None, donate_input=False):
    """Elementwise hard-sigmoid ReLU6(x+3)/6 on any-shape tensor via Pallas."""
    orig_shape = x.shape
    dtype = x.dtype
    total = x.size
    if total == 0:
        return x

    itemsize = jnp.dtype(dtype).itemsize
    packing = _sublane_packing(dtype)

    default_blk, vmem_limit = _generation_defaults()
    if target_block_bytes is None:
        target_block_bytes = default_blk

    cp_kwargs = {"dimension_semantics": ("parallel",)}
    if vmem_limit is not None:
        cp_kwargs["vmem_limit_bytes"] = vmem_limit
    compiler_params = pltpu.CompilerParams(**cp_kwargs)

    cost = pl.CostEstimate(flops=4 * total,
                           transcendentals=0,
                           bytes_accessed=2 * total * itemsize)

    call_kwargs = {}
    if donate_input:
        call_kwargs["input_output_aliases"] = {0: 0}

    x_flat = x.reshape(-1)  # metadata-only reshape of a contiguous array

    if total % _LANE == 0:
        # Common (zero-copy) path: lane-dense 2-D slab, unmasked stores.
        width = _LANE
        for cand in (4096, 2048, 1024, 512, 256):
            if total % cand == 0:
                width = cand
                break
        rows = total // width
        tr = _row_block(rows, width, itemsize, packing, target_block_bytes)
        grid = (pl.cdiv(rows, tr),)
        out2d = pl.pallas_call(
            _h_sigmoid_kernel,
            out_shape=jax.ShapeDtypeStruct((rows, width), dtype),
            grid_spec=pl.GridSpec(
                grid=grid,
                in_specs=[pl.BlockSpec((tr, width), lambda i: (i, 0))],
                out_specs=pl.BlockSpec((tr, width), lambda i: (i, 0)),
            ),
            compiler_params=compiler_params,
            cost_estimate=cost,
            **call_kwargs,
        )(x_flat.reshape(rows, width))
        return out2d.reshape(orig_shape)

    # Ragged path (total % 128 != 0): blocked 1-D kernel. The block width is a
    # multiple of 128; Pallas masks the partial final block, so no jnp.pad /
    # trailing-slice HBM round trips are needed.
    if total < _LANE:
        bw = total  # full-dim block is always legal
    else:
        cap_elems = max(_LANE,
                        (target_block_bytes // itemsize) // _LANE * _LANE)
        cap_elems = min(cap_elems, 128 * 1024)  # keep 1-D tiles modest
        bw = min(cap_elems, pl.cdiv(total, _LANE) * _LANE)
        if total >= _MIN_GRID_STEPS * _LANE:
            step_cap = max(_LANE,
                           pl.cdiv(total, _MIN_GRID_STEPS) // _LANE * _LANE)
            bw = min(bw, step_cap)
    grid = (pl.cdiv(total, bw),)
    out_flat = pl.pallas_call(
        _h_sigmoid_kernel,
        out_shape=jax.ShapeDtypeStruct((total,), dtype),
        grid_spec=pl.GridSpec(
            grid=grid,
            in_specs=[pl.BlockSpec((bw,), lambda i: (i,))],
            out_specs=pl.BlockSpec((bw,), lambda i: (i,)),
        ),
        compiler_params=compiler_params,
        cost_estimate=cost,
        **call_kwargs,
    )(x_flat)
    return out_flat.reshape(orig_shape)


def _ref_h_sigmoid(x):
    xf = x.astype(jnp.float32)
    return (jnp.clip(xf + 3.0, 0.0, 6.0) * (1.0 / 6.0)).astype(x.dtype)


if __name__ == "__main__":
    key = jax.random.PRNGKey(0)

    # 1) Main test: NCHW activation, zero-copy 2-D path (total % 128 == 0).
    x = jax.random.normal(key, (2, 4, 16, 16), dtype=jnp.float32) * 4.0
    y = jax.block_until_ready(h_sigmoid(x))
    y_ref = _ref_h_sigmoid(x)
    assert y.shape == x.shape and y.dtype == x.dtype
    assert jnp.max(jnp.abs(y - y_ref)) < 1e-6

    # 2) Ragged-tail path (total % 128 != 0) -> blocked 1-D kernel with a
    #    masked partial final block, plus a multi-step grid.
    x2 = jax.random.normal(jax.random.PRNGKey(1), (1, 3, 40, 40),
                           dtype=jnp.float32) * 4.0
    y2 = jax.block_until_ready(h_sigmoid(x2, target_block_bytes=8 * 1024))
    assert jnp.max(jnp.abs(y2 - _ref_h_sigmoid(x2))) < 1e-6

    # 3) bf16 path (f32 in-kernel compute, cast on store).
    x3 = (jax.random.normal(jax.random.PRNGKey(2), (2, 4, 16, 16),
                            dtype=jnp.float32) * 4.0).astype(jnp.bfloat16)
    y3 = jax.block_until_ready(h_sigmoid(x3))
    assert y3.dtype == jnp.bfloat16
    assert jnp.max(jnp.abs(y3.astype(jnp.float32) -
                           _ref_h_sigmoid(x3).astype(jnp.float32))) < 1e-2

    print("KERNEL_OK")
</pallas_src>

<mosaic_0001>
module attributes {stable_mosaic.version = 11 : i64} {
  func.func @_h_sigmoid_kernel(%arg0: i32, %arg1: memref<1x2048xf32, #tpu.memory_space<vmem>>, %arg2: memref<1x2048xf32, #tpu.memory_space<vmem>>) attributes {dimension_semantics = [#tpu.dimension_semantics<parallel>], iteration_bounds = array<i64: 1>, scalar_prefetch = 0 : i64, scratch_operands = 0 : i64, tpu.core_type = #tpu.core_type<tc>, window_params = [{transform_indices = @transform_0, window_bounds = array<i64: 1, 2048>}, {transform_indices = @transform_1, window_bounds = array<i64: 1, 2048>}]} {
    %c0 = arith.constant 0 : index
    %c0_0 = arith.constant 0 : index
    %0 = vector.load %arg1[%c0, %c0_0] : memref<1x2048xf32, #tpu.memory_space<vmem>>, vector<1x2048xf32>
    %cst = arith.constant 3.000000e+00 : f32
    %1 = vector.broadcast %cst : f32 to vector<1x2048xf32>
    %2 = arith.addf %0, %1 : vector<1x2048xf32>
    %cst_1 = arith.constant 0.000000e+00 : f32
    %cst_2 = arith.constant 6.000000e+00 : f32
    %3 = vector.broadcast %cst_1 : f32 to vector<1x2048xf32>
    %4 = arith.maximumf %3, %2 : vector<1x2048xf32>
    %5 = vector.broadcast %cst_2 : f32 to vector<1x2048xf32>
    %6 = arith.minimumf %5, %4 : vector<1x2048xf32>
    %cst_3 = arith.constant 0.166666672 : f32
    %7 = vector.broadcast %cst_3 : f32 to vector<1x2048xf32>
    %8 = arith.mulf %6, %7 : vector<1x2048xf32>
    %c0_4 = arith.constant 0 : index
    %c0_5 = arith.constant 0 : index
    %9 = vector.load %arg2[%c0_4, %c0_5] : memref<1x2048xf32, #tpu.memory_space<vmem>>, vector<1x2048xf32>
    tpu.vector_store %arg2[%c0_4, %c0_5], %8 {strides = array<i32>} : memref<1x2048xf32, #tpu.memory_space<vmem>>, vector<1x2048xf32>,
    return
  }
  func.func @transform_0(%arg0: i32) -> (i32, i32) {
    %c0_i32 = arith.constant 0 : i32
    %c0_i32_0 = arith.constant 0 : i32
    return %arg0, %c0_i32 : i32, i32
  }
  func.func @transform_1(%arg0: i32) -> (i32, i32) {
    %c0_i32 = arith.constant 0 : i32
    %c0_i32_0 = arith.constant 0 : i32
    return %arg0, %c0_i32 : i32, i32
  }
}

</mosaic_0001>

<bundles_post_ra>
// kernel: tpu_custom_call.1
= control target key start
LH: loop header
LB: loop body
LE: loop exit
PB: predicated region body
PF: predicated region fallthrough
CT: control target
= control target key end

     0   :  { %6 = vsyncpa [#allocation3], 0  ;;  %s124_s0 = inlined_call_operand.hbm [shape: f32[1,2048], index: 0, kind: input, shape index: {}]   ;;  %s125_s1 = inlined_call_operand.hbm [shape: f32[1,2048], index: 1, kind: output, shape index: {}]  }
   0x1   :  { %7 = vsyncpa [#allocation4], 0  ;;  %s13_s8 = sshll.u32 %s124_s0, 4  ;;  %s106_s9 = smov [#allocation2]   ;;  %s14_s8 = int_to_ptr.hbm [resolvable:$true] %s13_s8 }
   0x2   :  { %s15_s10 = sshll.u32 %s106_s9, 4  ;;  %s16_s10 = int_to_ptr.vmem [resolvable:$true] %s15_s10 }
   0x3   :  { %18 = dma.hbm_to_vmem [thread:$0]  %s14_s8, 256, %s16_s10, [#allocation3]  }
   0x4   :  { %102 = dma.done.wait [#allocation3], 256  }
   0x5   :  { %103 = vsyncadd [#allocation3], 4294967040  ;;  %v23_v0 = vld [vmem:[#allocation2] sm:$0xff]  ;;  %v24_v1 = vld [vmem:[#allocation2 + $0x8] sm:$0xff]  ;;  %s107_s11 = smov [#allocation5]   ;;  %s42_s0 = sshll.u32 %s125_s1, 4  ;;  %s43_s0 = int_to_ptr.hbm [resolvable:$true] %s42_s0 }
   0x6   :  { %v25_v2 = vadd.f32 3.0, %v23_v0  ;;  %v26_v3 = vadd.f32 3.0, %v24_v1  ;;  %s40_s12 = sshll.u32 %s107_s11, 4  ;;  %s41_s12 = int_to_ptr.vmem [resolvable:$true] %s40_s12 }
   0x8   :  { %v27_v4 = vmax.f32 %v25_v2, 0.0  ;;  %v28_v5 = vmax.f32 %v26_v3, 0.0 }
   0xa   :  { %v29_v6 = vmin.f32 %v27_v4, 6.0  ;;  %v30_v7 = vmin.f32 %v28_v5, 6.0 }
   0xc   :  { %v31_v8 = vmul.f32 0.16666667, %v29_v6  ;;  %v32_v9 = vmul.f32 0.16666667, %v30_v7 }
   0xe   :  { %33 = vst [vmem:[#allocation5] sm:$0xff] %v31_v8 }
   0xf   :  { %34 = vst [vmem:[#allocation5 + $0x8] sm:$0xff] %v32_v9 }
  0x10   :  { %45 = dma.vmem_to_hbm [thread:$0]  %s41_s12, 256, %s43_s0, [#allocation4]  }
  0x11   :  { %104 = dma.done.wait [#allocation4], 256  }
  0x12   :  { %105 = vsyncadd [#allocation4], 4294967040 }
  0x13   :  { %50 = vsyncpa [#allocation3], 1 }
  0x14   :  { %51 = vsyncpa [#allocation4], 1 }

</bundles_post_ra>
